<compile_context>
chip_gen: v7x
topology: tpu7x:2x2x1
jax: 0.10.0
libtpu: 0.0.40
codegen_flags: <defaults>
</compile_context>

<pallas_src>
import jax
import jax.numpy as jnp
from jax.experimental import pallas as pl
from jax.experimental.pallas import tpu as pltpu


def _pick_s_tile(S, target=512):
    """Largest divisor of S that is a multiple of 8 and <= target; else the full S."""
    if S <= target:
        return S
    for t in range(target, 7, -1):
        if S % t == 0 and t % 8 == 0:
            return t
    return S


def hsp_forward(x, params, *, s_tile_target=512, mm_dtype=jnp.float32):
    """x: (B, C, D, H, W) float32 NCDHW, even spatial dims. Returns (B, 2C, D/2, H/2, W/2)."""
    w1, w2, w3f, w4, bn_s, bn_b, bn4_s, bn4_b, alpha, wse1, wse2 = params
    B, C, D, H, W = x.shape
    Dp, Hp, Wp = D // 2, H // 2, W // 2
    S = Dp * Hp * Wp
    C2 = 2 * C
    r = wse1.shape[1]

    # ---- one-time constant folding: BN scales -> conv weight columns -------------------
    w1s = w1 * bn_s[0][None, :]                                  # cv1 * bn1.scale   (C, C)
    w2s = 0.125 * w2 * bn_s[1][None, :]                          # avgpool folded    (C, C)
    w3s = w3f * bn_s[2][None, :]                                 # cv3 * bn3.scale   (8C, C)
    w23 = jnp.concatenate([jnp.tile(w2s, (8, 1)), w3s], axis=1)  # (8C, 2C): [avg|conv] cols
    b1 = bn_b[0].reshape(1, C)                                   # bn1 shift
    b23 = jnp.concatenate([bn_b[1], bn_b[2]]).reshape(1, C2)     # [bn2|bn3] shifts
    w4s = w4 * bn4_s                                             # cv4 * bn4.scale   (3C, 2C)
    w4a = w4s[0:C, :]                                            # rows hit by max branch
    w4b = w4s[C:, :]                                             # rows hit by [avg|conv]
    sh4 = bn4_b                                                  # (1, 2C)

    # ---- single wrapper pass: extract 2x2x2 windows, taps ordered (kd,kh,kw,c) ---------
    xf = (x.reshape(B, C, Dp, 2, Hp, 2, Wp, 2)
           .transpose(0, 2, 4, 6, 3, 5, 7, 1)
           .reshape(B, S, 8 * C))

    # bf16 MXU operands (optional); accumulation, BN shifts, PReLU and SE stay f32.
    xf = xf.astype(mm_dtype)
    w1s = w1s.astype(mm_dtype)
    w23 = w23.astype(mm_dtype)
    w4a = w4a.astype(mm_dtype)
    w4b = w4b.astype(mm_dtype)
    alpha1 = alpha.reshape(1).astype(jnp.float32)                # scalar -> SMEM

    TS = _pick_s_tile(S, s_tile_target)
    nS = S // TS

    def kernel(xf_ref, w1_ref, w23_ref, b1_ref, b23_ref, w4a_ref, w4b_ref, sh4_ref,
               alpha_ref, wse1_ref, wse2_ref, out_ref, se_sum_ref):
        s = pl.program_id(1)
        a = alpha_ref[0]                                         # PReLU shared alpha (SMEM)

        xf_t = xf_ref[0]                                         # (TS, 8C)
        # Max pool over the 8 window taps: static lane slices reduced on the VPU.
        maxp = xf_t[:, 0:C]
        for k in range(1, 8):
            maxp = jnp.maximum(maxp, xf_t[:, k * C:(k + 1) * C])

        # Branch matmuls (BN scales + avgpool already folded into the weights).
        pre_m = (jnp.dot(maxp, w1_ref[...], preferred_element_type=jnp.float32)
                 + b1_ref[...])                                  # (TS, C)  max branch
        pre_r = (jnp.dot(xf_t, w23_ref[...], preferred_element_type=jnp.float32)
                 + b23_ref[...])                                 # (TS, 2C) [avg|conv] branches
        act_m = jnp.where(pre_m > 0, pre_m, a * pre_m)           # PReLU (f32)
        act_r = jnp.where(pre_r > 0, pre_r, a * pre_r)

        # cv4 + BN4, split over the branch rows -> no concat ever materialized.
        o = (jnp.dot(act_m.astype(w4a_ref.dtype), w4a_ref[...],
                     preferred_element_type=jnp.float32)
             + jnp.dot(act_r.astype(w4b_ref.dtype), w4b_ref[...],
                       preferred_element_type=jnp.float32)
             + sh4_ref[...])                                     # (TS, 2C) f32

        # SE channel-sum accumulator (f32), reset at the first S tile of each batch elem.
        @pl.when(s == 0)
        def _():
            se_sum_ref[...] = jnp.zeros_like(se_sum_ref)
        se_sum_ref[...] += jnp.sum(o, axis=0, keepdims=True)

        # Stash this tile's rows into the per-batch resident output block.
        row0 = pl.multiple_of(s * TS, TS)
        out_ref[0, pl.ds(row0, TS), :] = o.astype(out_ref.dtype)

        # Last S tile: finish SE (global mean -> FC -> ReLU -> FC -> sigmoid) and gate.
        @pl.when(s == pl.num_programs(1) - 1)
        def _():
            y = se_sum_ref[...] * (1.0 / S)                      # (1, 2C) global mean
            y = jnp.maximum(jnp.dot(y, wse1_ref[...],
                                    preferred_element_type=jnp.float32), 0.0)
            y = jax.nn.sigmoid(jnp.dot(y, wse2_ref[...],
                                       preferred_element_type=jnp.float32))
            out_ref[0] = out_ref[0] * y                          # channel-wise gate

    out = pl.pallas_call(
        kernel,
        out_shape=jax.ShapeDtypeStruct((B, S, C2), jnp.float32),
        grid_spec=pltpu.PrefetchScalarGridSpec(
            num_scalar_prefetch=0,
            grid=(B, nS),
            in_specs=[
                pl.BlockSpec((1, TS, 8 * C), lambda b, s: (b, s, 0)),     # xf tile (streamed)
                pl.BlockSpec((C, C), lambda b, s: (0, 0)),                # cv1 (bn1 folded)
                pl.BlockSpec((8 * C, C2), lambda b, s: (0, 0)),           # [avg|conv] weights
                pl.BlockSpec((1, C), lambda b, s: (0, 0)),                # bn1 shift
                pl.BlockSpec((1, C2), lambda b, s: (0, 0)),               # bn2|bn3 shifts
                pl.BlockSpec((C, C2), lambda b, s: (0, 0)),               # cv4 rows (max)
                pl.BlockSpec((C2, C2), lambda b, s: (0, 0)),              # cv4 rows (avg|conv)
                pl.BlockSpec((1, C2), lambda b, s: (0, 0)),               # bn4 shift
                pl.BlockSpec(memory_space=pltpu.MemorySpace.SMEM),        # prelu alpha scalar
                pl.BlockSpec((C2, r), lambda b, s: (0, 0)),               # se fc1
                pl.BlockSpec((r, C2), lambda b, s: (0, 0)),               # se fc2
            ],
            # Output block stays resident across the S-tile axis (index constant in s),
            # written back to HBM once per batch element (single output HBM pass incl. SE gate).
            out_specs=pl.BlockSpec((1, S, C2), lambda b, s: (b, 0, 0)),
            scratch_shapes=[pltpu.VMEM((1, C2), jnp.float32)],            # SE channel sum
        ),
        compiler_params=pltpu.CompilerParams(
            dimension_semantics=("parallel", "arbitrary")),
    )(xf, w1s, w23, b1, b23, w4a, w4b, sh4, alpha1, wse1, wse2)

    # back to NCDHW to match the PyTorch module's output layout
    return out.reshape(B, Dp, Hp, Wp, C2).transpose(0, 4, 1, 2, 3)


def init_params(key, C, reduction):
    """Deterministic synthetic parameters matching HSPModule(planes=C, reduction)."""
    C2, C3 = 2 * C, 3 * C
    r = C2 // reduction
    ks = jax.random.split(key, 10)
    eps = 1e-5

    def bn_fold(k, n):
        kg, kb, km, kv = jax.random.split(k, 4)
        gamma = 1.0 + 0.1 * jax.random.normal(kg, (n,), jnp.float32)
        beta = 0.1 * jax.random.normal(kb, (n,), jnp.float32)
        mean = 0.1 * jax.random.normal(km, (n,), jnp.float32)
        var = jax.nn.softplus(jax.random.normal(kv, (n,), jnp.float32)) + 0.5
        scale = gamma / jnp.sqrt(var + eps)
        shift = beta - mean * scale
        return scale, shift

    w1 = 0.2 * jax.random.normal(ks[0], (C, C), jnp.float32)           # cv1 (in, out)
    w2 = 0.2 * jax.random.normal(ks[1], (C, C), jnp.float32)           # cv2 (in, out)
    w3 = 0.1 * jax.random.normal(ks[2], (2, 2, 2, C, C), jnp.float32)  # cv3 (kd,kh,kw,in,out)
    w3f = w3.reshape(8 * C, C)
    w4 = 0.15 * jax.random.normal(ks[3], (C3, C2), jnp.float32)        # cv4 (in, out)

    s1, b1 = bn_fold(ks[4], C)
    s2, b2 = bn_fold(ks[5], C)
    s3, b3 = bn_fold(ks[6], C)
    s4, b4 = bn_fold(ks[7], C2)
    bn_s = jnp.stack([s1, s2, s3], axis=0)      # (3, C)
    bn_b = jnp.stack([b1, b2, b3], axis=0)      # (3, C)
    bn4_s = s4[None, :]
    bn4_b = b4[None, :]

    alpha = jnp.full((1, 1), 0.25, jnp.float32)  # nn.PReLU() default init
    wse1 = 0.3 * jax.random.normal(ks[8], (C2, r), jnp.float32)
    wse2 = 0.3 * jax.random.normal(ks[9], (r, C2), jnp.float32)
    return (w1, w2, w3f, w4, bn_s, bn_b, bn4_s, bn4_b, alpha, wse1, wse2)


def hsp_reference(x, params):
    """Pure-JAX reference of the PyTorch forward (eval-mode BN), NCDHW in / NCDHW out."""
    w1, w2, w3f, w4, bn_s, bn_b, bn4_s, bn4_b, alpha, wse1, wse2 = params
    B, C, D, H, W = x.shape
    Dp, Hp, Wp = D // 2, H // 2, W // 2
    al = alpha[0, 0]

    def bc(v):
        return v[None, :, None, None, None]

    def prelu(v):
        return jnp.where(v > 0, v, al * v)

    xr = x.reshape(B, C, Dp, 2, Hp, 2, Wp, 2)
    maxp = xr.max(axis=(3, 5, 7))
    avgp = xr.mean(axis=(3, 5, 7))
    patches = xr.transpose(0, 2, 4, 6, 3, 5, 7, 1)               # (B,Dp,Hp,Wp,kd,kh,kw,C)
    w3 = w3f.reshape(2, 2, 2, C, C)
    conv = jnp.einsum('bdhwklmi,klmio->bodhw', patches, w3)

    m = prelu(jnp.einsum('bidhw,io->bodhw', maxp, w1) * bc(bn_s[0]) + bc(bn_b[0]))
    a = prelu(jnp.einsum('bidhw,io->bodhw', avgp, w2) * bc(bn_s[1]) + bc(bn_b[1]))
    c = prelu(conv * bc(bn_s[2]) + bc(bn_b[2]))

    cat = jnp.concatenate([m, a, c], axis=1)                     # (B, 3C, Dp, Hp, Wp)
    o = jnp.einsum('bidhw,io->bodhw', cat, w4)
    o = o * bc(bn4_s[0]) + bc(bn4_b[0])

    y = o.mean(axis=(2, 3, 4))                                   # (B, 2C)
    y = jnp.maximum(y @ wse1, 0.0)
    y = jax.nn.sigmoid(y @ wse2)
    return o * y[:, :, None, None, None]


if __name__ == "__main__":
    # Small shapes consistent with the module: planes=8, reduction=4 (so 2*planes//reduction > 0)
    B, C, D, H, W = 2, 8, 8, 8, 8
    reduction = 4

    key = jax.random.PRNGKey(0)
    kx, kp = jax.random.split(key)
    x = jax.random.normal(kx, (B, C, D, H, W), jnp.float32)
    params = init_params(kp, C, reduction)

    # f32 path: strict numerical parity with the reference.
    out = jax.block_until_ready(hsp_forward(x, params))
    assert out.shape == (B, 2 * C, D // 2, H // 2, W // 2), out.shape
    ref = hsp_reference(x, params)
    assert jnp.allclose(out, ref, atol=1e-4, rtol=1e-4), float(jnp.max(jnp.abs(out - ref)))

    # bf16-MXU path (halves matmul HBM/VMEM bytes on v5e/v6e/v7x; f32 accumulation & SE math).
    out_bf16 = jax.block_until_ready(hsp_forward(x, params, mm_dtype=jnp.bfloat16))
    assert out_bf16.shape == out.shape
    assert jnp.allclose(out_bf16, ref, atol=2e-1, rtol=2e-1), \
        float(jnp.max(jnp.abs(out_bf16 - ref)))

    print("KERNEL_OK")
</pallas_src>

<mosaic_0001>
module attributes {stable_mosaic.version = 11 : i64} {
  func.func @kernel(%arg0: i32, %arg1: i32, %arg2: memref<1x64x64xf32, #tpu.memory_space<vmem>>, %arg3: memref<8x8xf32, #tpu.memory_space<vmem>>, %arg4: memref<64x16xf32, #tpu.memory_space<vmem>>, %arg5: memref<1x8xf32, #tpu.memory_space<vmem>>, %arg6: memref<1x16xf32, #tpu.memory_space<vmem>>, %arg7: memref<8x16xf32, #tpu.memory_space<vmem>>, %arg8: memref<16x16xf32, #tpu.memory_space<vmem>>, %arg9: memref<1x16xf32, #tpu.memory_space<vmem>>, %arg10: memref<1xf32, #tpu.memory_space<smem>>, %arg11: memref<16x4xf32, #tpu.memory_space<vmem>>, %arg12: memref<4x16xf32, #tpu.memory_space<vmem>>, %arg13: memref<1x64x16xf32, #tpu.memory_space<vmem>>, %arg14: memref<1x16xf32, #tpu.memory_space<vmem>>) attributes {dimension_semantics = [#tpu.dimension_semantics<parallel>, #tpu.dimension_semantics<arbitrary>], iteration_bounds = array<i64: 2, 1>, scalar_prefetch = 0 : i64, scratch_operands = 1 : i64, tpu.core_type = #tpu.core_type<tc>, window_params = [{transform_indices = @transform_0, window_bounds = array<i64: 1, 64, 64>}, {pipeline_mode = #tpu.pipeline_mode<synchronous>, transform_indices = @transform_1, window_bounds = array<i64: 8, 8>}, {pipeline_mode = #tpu.pipeline_mode<synchronous>, transform_indices = @transform_2, window_bounds = array<i64: 64, 16>}, {pipeline_mode = #tpu.pipeline_mode<synchronous>, transform_indices = @transform_3, window_bounds = array<i64: 1, 8>}, {pipeline_mode = #tpu.pipeline_mode<synchronous>, transform_indices = @transform_4, window_bounds = array<i64: 1, 16>}, {pipeline_mode = #tpu.pipeline_mode<synchronous>, transform_indices = @transform_5, window_bounds = array<i64: 8, 16>}, {pipeline_mode = #tpu.pipeline_mode<synchronous>, transform_indices = @transform_6, window_bounds = array<i64: 16, 16>}, {pipeline_mode = #tpu.pipeline_mode<synchronous>, transform_indices = @transform_7, window_bounds = array<i64: 1, 16>}, {transform_indices = @transform_8, window_bounds = array<i64: 1>}, {pipeline_mode = #tpu.pipeline_mode<synchronous>, transform_indices = @transform_9, window_bounds = array<i64: 16, 4>}, {pipeline_mode = #tpu.pipeline_mode<synchronous>, transform_indices = @transform_10, window_bounds = array<i64: 4, 16>}, {transform_indices = @transform_11, window_bounds = array<i64: 1, 64, 16>}]} {
    %c0 = arith.constant 0 : index
    %0 = memref.load %arg10[%c0] : memref<1xf32, #tpu.memory_space<smem>>
    %c0_0 = arith.constant 0 : index
    %c0_1 = arith.constant 0 : index
    %c0_2 = arith.constant 0 : index
    %1 = vector.load %arg2[%c0_0, %c0_1, %c0_2] : memref<1x64x64xf32, #tpu.memory_space<vmem>>, vector<1x64x64xf32>
    %2 = vector.shape_cast %1 : vector<1x64x64xf32> to vector<64x64xf32>
    %3 = vector.extract_strided_slice %2 {offsets = [0, 0], sizes = [64, 8], strides = [1, 1]} : vector<64x64xf32> to vector<64x8xf32>
    %4 = vector.extract_strided_slice %2 {offsets = [0, 8], sizes = [64, 8], strides = [1, 1]} : vector<64x64xf32> to vector<64x8xf32>
    %5 = arith.maximumf %3, %4 : vector<64x8xf32>
    %6 = vector.extract_strided_slice %2 {offsets = [0, 16], sizes = [64, 8], strides = [1, 1]} : vector<64x64xf32> to vector<64x8xf32>
    %7 = arith.maximumf %5, %6 : vector<64x8xf32>
    %8 = vector.extract_strided_slice %2 {offsets = [0, 24], sizes = [64, 8], strides = [1, 1]} : vector<64x64xf32> to vector<64x8xf32>
    %9 = arith.maximumf %7, %8 : vector<64x8xf32>
    %10 = vector.extract_strided_slice %2 {offsets = [0, 32], sizes = [64, 8], strides = [1, 1]} : vector<64x64xf32> to vector<64x8xf32>
    %11 = arith.maximumf %9, %10 : vector<64x8xf32>
    %12 = vector.extract_strided_slice %2 {offsets = [0, 40], sizes = [64, 8], strides = [1, 1]} : vector<64x64xf32> to vector<64x8xf32>
    %13 = arith.maximumf %11, %12 : vector<64x8xf32>
    %14 = vector.extract_strided_slice %2 {offsets = [0, 48], sizes = [64, 8], strides = [1, 1]} : vector<64x64xf32> to vector<64x8xf32>
    %15 = arith.maximumf %13, %14 : vector<64x8xf32>
    %16 = vector.extract_strided_slice %2 {offsets = [0, 56], sizes = [64, 8], strides = [1, 1]} : vector<64x64xf32> to vector<64x8xf32>
    %17 = arith.maximumf %15, %16 : vector<64x8xf32>
    %c0_3 = arith.constant 0 : index
    %c0_4 = arith.constant 0 : index
    %18 = vector.load %arg3[%c0_3, %c0_4] : memref<8x8xf32, #tpu.memory_space<vmem>>, vector<8x8xf32>
    %cst = arith.constant dense<0.000000e+00> : vector<64x8xf32>
    %19 = tpu.matmul %17, %18, %cst {dimension_numbers = #tpu.dot_dimension_numbers<[1], [0], [0], [1], [0, 0, 1, 1], [], []>} : vector<64x8xf32>, vector<8x8xf32>, vector<64x8xf32> -> vector<64x8xf32>
    %c0_5 = arith.constant 0 : index
    %c0_6 = arith.constant 0 : index
    %20 = vector.load %arg5[%c0_5, %c0_6] : memref<1x8xf32, #tpu.memory_space<vmem>>, vector<1x8xf32>
    %21 = vector.broadcast %20 : vector<1x8xf32> to vector<64x8xf32>
    %22 = arith.addf %19, %21 : vector<64x8xf32>
    %c0_7 = arith.constant 0 : index
    %c0_8 = arith.constant 0 : index
    %23 = vector.load %arg4[%c0_7, %c0_8] : memref<64x16xf32, #tpu.memory_space<vmem>>, vector<64x16xf32>
    %cst_9 = arith.constant dense<0.000000e+00> : vector<64x16xf32>
    %24 = tpu.matmul %2, %23, %cst_9 {dimension_numbers = #tpu.dot_dimension_numbers<[1], [0], [0], [1], [0, 0, 1, 1], [], []>} : vector<64x64xf32>, vector<64x16xf32>, vector<64x16xf32> -> vector<64x16xf32>
    %c0_10 = arith.constant 0 : index
    %c0_11 = arith.constant 0 : index
    %25 = vector.load %arg6[%c0_10, %c0_11] : memref<1x16xf32, #tpu.memory_space<vmem>>, vector<1x16xf32>
    %26 = vector.broadcast %25 : vector<1x16xf32> to vector<64x16xf32>
    %27 = arith.addf %24, %26 : vector<64x16xf32>
    %cst_12 = arith.constant 0.000000e+00 : f32
    %28 = vector.broadcast %cst_12 : f32 to vector<64x8xf32>
    %29 = arith.cmpf ogt, %22, %28 : vector<64x8xf32>
    %30 = vector.broadcast %0 : f32 to vector<64x8xf32>
    %31 = arith.mulf %30, %22 : vector<64x8xf32>
    %32 = arith.select %29, %22, %31 : vector<64x8xi1>, vector<64x8xf32>
    %cst_13 = arith.constant 0.000000e+00 : f32
    %33 = vector.broadcast %cst_13 : f32 to vector<64x16xf32>
    %34 = arith.cmpf ogt, %27, %33 : vector<64x16xf32>
    %35 = vector.broadcast %0 : f32 to vector<64x16xf32>
    %36 = arith.mulf %35, %27 : vector<64x16xf32>
    %37 = arith.select %34, %27, %36 : vector<64x16xi1>, vector<64x16xf32>
    %c0_14 = arith.constant 0 : index
    %c0_15 = arith.constant 0 : index
    %38 = vector.load %arg7[%c0_14, %c0_15] : memref<8x16xf32, #tpu.memory_space<vmem>>, vector<8x16xf32>
    %cst_16 = arith.constant dense<0.000000e+00> : vector<64x16xf32>
    %39 = tpu.matmul %32, %38, %cst_16 {dimension_numbers = #tpu.dot_dimension_numbers<[1], [0], [0], [1], [0, 0, 1, 1], [], []>} : vector<64x8xf32>, vector<8x16xf32>, vector<64x16xf32> -> vector<64x16xf32>
    %c0_17 = arith.constant 0 : index
    %c0_18 = arith.constant 0 : index
    %40 = vector.load %arg8[%c0_17, %c0_18] : memref<16x16xf32, #tpu.memory_space<vmem>>, vector<16x16xf32>
    %cst_19 = arith.constant dense<0.000000e+00> : vector<64x16xf32>
    %41 = tpu.matmul %37, %40, %cst_19 {dimension_numbers = #tpu.dot_dimension_numbers<[1], [0], [0], [1], [0, 0, 1, 1], [], []>} : vector<64x16xf32>, vector<16x16xf32>, vector<64x16xf32> -> vector<64x16xf32>
    %42 = arith.addf %39, %41 : vector<64x16xf32>
    %c0_20 = arith.constant 0 : index
    %c0_21 = arith.constant 0 : index
    %43 = vector.load %arg9[%c0_20, %c0_21] : memref<1x16xf32, #tpu.memory_space<vmem>>, vector<1x16xf32>
    %44 = vector.broadcast %43 : vector<1x16xf32> to vector<64x16xf32>
    %45 = arith.addf %42, %44 : vector<64x16xf32>
    %c0_i32 = arith.constant 0 : i32
    %46 = arith.cmpi eq, %arg1, %c0_i32 : i32
    %47 = arith.extui %46 : i1 to i32
    %c0_i32_22 = arith.constant 0 : i32
    %48 = arith.cmpi ne, %47, %c0_i32_22 : i32
    scf.if %48 {
      %cst_32 = arith.constant 0.000000e+00 : f32
      %63 = vector.broadcast %cst_32 : f32 to vector<1x16xf32>
      %c0_33 = arith.constant 0 : index
      %c0_34 = arith.constant 0 : index
      %64 = vector.load %arg14[%c0_33, %c0_34] : memref<1x16xf32, #tpu.memory_space<vmem>>, vector<1x16xf32>
      tpu.vector_store %arg14[%c0_33, %c0_34], %63 {strides = array<i32>} : memref<1x16xf32, #tpu.memory_space<vmem>>, vector<1x16xf32>,
    } else {
    }
    %c0_23 = arith.constant 0 : index
    %c0_24 = arith.constant 0 : index
    %49 = vector.load %arg14[%c0_23, %c0_24] : memref<1x16xf32, #tpu.memory_space<vmem>>, vector<1x16xf32>
    %cst_25 = arith.constant dense<0.000000e+00> : vector<16xf32>
    %50 = vector.multi_reduction <add>, %45, %cst_25 [0] : vector<64x16xf32> to vector<16xf32>
    %51 = vector.shape_cast %50 : vector<16xf32> to vector<1x16xf32>
    %52 = arith.addf %49, %51 : vector<1x16xf32>
    %c0_26 = arith.constant 0 : index
    %c0_27 = arith.constant 0 : index
    %53 = vector.load %arg14[%c0_26, %c0_27] : memref<1x16xf32, #tpu.memory_space<vmem>>, vector<1x16xf32>
    tpu.vector_store %arg14[%c0_26, %c0_27], %52 {strides = array<i32>} : memref<1x16xf32, #tpu.memory_space<vmem>>, vector<1x16xf32>,
    %c64_i32 = arith.constant 64 : i32
    %54 = arith.muli %arg1, %c64_i32 : i32
    %55 = tpu.assume_multiple %54, 64 : i32
    %c0_28 = arith.constant 0 : index
    %56 = arith.index_cast %55 : i32 to index
    %c0_29 = arith.constant 0 : index
    %57 = vector.load %arg13[%c0_28, %56, %c0_29] : memref<1x64x16xf32, #tpu.memory_space<vmem>>, vector<1x64x16xf32>
    %58 = vector.shape_cast %57 : vector<1x64x16xf32> to vector<64x16xf32>
    %59 = vector.shape_cast %45 : vector<64x16xf32> to vector<1x64x16xf32>
    tpu.vector_store %arg13[%c0_28, %56, %c0_29], %59 {strides = array<i32>} : memref<1x64x16xf32, #tpu.memory_space<vmem>>, vector<1x64x16xf32>,
    %c0_i32_30 = arith.constant 0 : i32
    %60 = arith.cmpi eq, %arg1, %c0_i32_30 : i32
    %61 = arith.extui %60 : i1 to i32
    %c0_i32_31 = arith.constant 0 : i32
    %62 = arith.cmpi ne, %61, %c0_i32_31 : i32
    scf.if %62 {
      %c0_32 = arith.constant 0 : index
      %c0_33 = arith.constant 0 : index
      %63 = vector.load %arg14[%c0_32, %c0_33] : memref<1x16xf32, #tpu.memory_space<vmem>>, vector<1x16xf32>
      %cst_34 = arith.constant 1.562500e-02 : f32
      %64 = vector.broadcast %cst_34 : f32 to vector<1x16xf32>
      %65 = arith.mulf %63, %64 : vector<1x16xf32>
      %c0_35 = arith.constant 0 : index
      %c0_36 = arith.constant 0 : index
      %66 = vector.load %arg11[%c0_35, %c0_36] : memref<16x4xf32, #tpu.memory_space<vmem>>, vector<16x4xf32>
      %cst_37 = arith.constant dense<0.000000e+00> : vector<1x4xf32>
      %67 = tpu.matmul %65, %66, %cst_37 {dimension_numbers = #tpu.dot_dimension_numbers<[1], [0], [0], [1], [0, 0, 1, 1], [], []>} : vector<1x16xf32>, vector<16x4xf32>, vector<1x4xf32> -> vector<1x4xf32>
      %cst_38 = arith.constant 0.000000e+00 : f32
      %68 = vector.broadcast %cst_38 : f32 to vector<1x4xf32>
      %69 = arith.maximumf %67, %68 : vector<1x4xf32>
      %c0_39 = arith.constant 0 : index
      %c0_40 = arith.constant 0 : index
      %70 = vector.load %arg12[%c0_39, %c0_40] : memref<4x16xf32, #tpu.memory_space<vmem>>, vector<4x16xf32>
      %cst_41 = arith.constant dense<0.000000e+00> : vector<1x16xf32>
      %71 = tpu.matmul %69, %70, %cst_41 {dimension_numbers = #tpu.dot_dimension_numbers<[1], [0], [0], [1], [0, 0, 1, 1], [], []>} : vector<1x4xf32>, vector<4x16xf32>, vector<1x16xf32> -> vector<1x16xf32>
      %72 = arith.negf %71 : vector<1x16xf32>
      %73 = math.exp %72 : vector<1x16xf32>
      %cst_42 = arith.constant 1.000000e+00 : f32
      %74 = vector.broadcast %cst_42 : f32 to vector<1x16xf32>
      %75 = arith.addf %74, %73 : vector<1x16xf32>
      %76 = arith.divf %74, %75 : vector<1x16xf32>
      %c0_43 = arith.constant 0 : index
      %c0_44 = arith.constant 0 : index
      %c0_45 = arith.constant 0 : index
      %77 = vector.load %arg13[%c0_43, %c0_44, %c0_45] : memref<1x64x16xf32, #tpu.memory_space<vmem>>, vector<1x64x16xf32>
      %78 = vector.shape_cast %77 : vector<1x64x16xf32> to vector<64x16xf32>
      %79 = vector.broadcast %76 : vector<1x16xf32> to vector<64x16xf32>
      %80 = arith.mulf %78, %79 : vector<64x16xf32>
      %c0_46 = arith.constant 0 : index
      %c0_47 = arith.constant 0 : index
      %c0_48 = arith.constant 0 : index
      %81 = vector.load %arg13[%c0_46, %c0_47, %c0_48] : memref<1x64x16xf32, #tpu.memory_space<vmem>>, vector<1x64x16xf32>
      %82 = vector.shape_cast %81 : vector<1x64x16xf32> to vector<64x16xf32>
      %83 = vector.shape_cast %80 : vector<64x16xf32> to vector<1x64x16xf32>
      tpu.vector_store %arg13[%c0_46, %c0_47, %c0_48], %83 {strides = array<i32>} : memref<1x64x16xf32, #tpu.memory_space<vmem>>, vector<1x64x16xf32>,
    } else {
    }
    return
  }
  func.func @transform_0(%arg0: i32, %arg1: i32) -> (i32, i32, i32) {
    %c0_i32 = arith.constant 0 : i32
    %c0_i32_0 = arith.constant 0 : i32
    return %arg0, %arg1, %c0_i32 : i32, i32, i32
  }
  func.func @transform_1(%arg0: i32, %arg1: i32) -> (i32, i32) {
    %c0_i32 = arith.constant 0 : i32
    %c0_i32_0 = arith.constant 0 : i32
    %c0_i32_1 = arith.constant 0 : i32
    return %c0_i32, %c0_i32_0 : i32, i32
  }
  func.func @transform_2(%arg0: i32, %arg1: i32) -> (i32, i32) {
    %c0_i32 = arith.constant 0 : i32
    %c0_i32_0 = arith.constant 0 : i32
    %c0_i32_1 = arith.constant 0 : i32
    return %c0_i32, %c0_i32_0 : i32, i32
  }
  func.func @transform_3(%arg0: i32, %arg1: i32) -> (i32, i32) {
    %c0_i32 = arith.constant 0 : i32
    %c0_i32_0 = arith.constant 0 : i32
    %c0_i32_1 = arith.constant 0 : i32
    return %c0_i32, %c0_i32_0 : i32, i32
  }
  func.func @transform_4(%arg0: i32, %arg1: i32) -> (i32, i32) {
    %c0_i32 = arith.constant 0 : i32
    %c0_i32_0 = arith.constant 0 : i32
    %c0_i32_1 = arith.constant 0 : i32
    return %c0_i32, %c0_i32_0 : i32, i32
  }
  func.func @transform_5(%arg0: i32, %arg1: i32) -> (i32, i32) {
    %c0_i32 = arith.constant 0 : i32
    %c0_i32_0 = arith.constant 0 : i32
    %c0_i32_1 = arith.constant 0 : i32
    return %c0_i32, %c0_i32_0 : i32, i32
  }
  func.func @transform_6(%arg0: i32, %arg1: i32) -> (i32, i32) {
    %c0_i32 = arith.constant 0 : i32
    %c0_i32_0 = arith.constant 0 : i32
    %c0_i32_1 = arith.constant 0 : i32
    return %c0_i32, %c0_i32_0 : i32, i32
  }
  func.func @transform_7(%arg0: i32, %arg1: i32) -> (i32, i32) {
    %c0_i32 = arith.constant 0 : i32
    %c0_i32_0 = arith.constant 0 : i32
    %c0_i32_1 = arith.constant 0 : i32
    return %c0_i32, %c0_i32_0 : i32, i32
  }
  func.func @transform_8(%arg0: i32, %arg1: i32) -> i32 {
    %c0_i32 = arith.constant 0 : i32
    %c0_i32_0 = arith.constant 0 : i32
    return %c0_i32 : i32
  }
  func.func @transform_9(%arg0: i32, %arg1: i32) -> (i32, i32) {
    %c0_i32 = arith.constant 0 : i32
    %c0_i32_0 = arith.constant 0 : i32
    %c0_i32_1 = arith.constant 0 : i32
    return %c0_i32, %c0_i32_0 : i32, i32
  }
  func.func @transform_10(%arg0: i32, %arg1: i32) -> (i32, i32) {
    %c0_i32 = arith.constant 0 : i32
    %c0_i32_0 = arith.constant 0 : i32
    %c0_i32_1 = arith.constant 0 : i32
    return %c0_i32, %c0_i32_0 : i32, i32
  }
  func.func @transform_11(%arg0: i32, %arg1: i32) -> (i32, i32, i32) {
    %c0_i32 = arith.constant 0 : i32
    %c0_i32_0 = arith.constant 0 : i32
    %c0_i32_1 = arith.constant 0 : i32
    return %arg0, %c0_i32, %c0_i32_0 : i32, i32, i32
  }
}

</mosaic_0001>

<bundles_post_ra>
// kernel: tpu_custom_call.1
= control target key start
LH: loop header
LB: loop body
LE: loop exit
PB: predicated region body
PF: predicated region fallthrough
CT: control target
= control target key end

     0   :  { %s2514_s0 = inlined_call_operand.hbm [shape: f32[2,64,64], index: 0, kind: input, shape index: {}]   ;;  %s2515_s1 = inlined_call_operand.vmem [shape: f32[8,8], index: 1, kind: input, shape index: {}]   ;;  %s2516_s2 = inlined_call_operand.vmem [shape: f32[64,16], index: 2, kind: input, shape index: {}]   ;;  %s2517_s3 = inlined_call_operand.vmem [shape: f32[1,8], index: 3, kind: input, shape index: {}]   ;;  %s2518_s4 = inlined_call_operand.vmem [shape: f32[1,16], index: 4, kind: input, shape index: {}]   ;;  %s2519_s5 = inlined_call_operand.vmem [shape: f32[8,16], index: 5, kind: input, shape index: {}]   ;;  %s2520_s6 = inlined_call_operand.vmem [shape: f32[16,16], index: 6, kind: input, shape index: {}]   ;;  %s2521_s7 = inlined_call_operand.vmem [shape: f32[1,16], index: 7, kind: input, shape index: {}]   ;;  %s2522_s8 = inlined_call_operand.<no memory space> [shape: f32[1], index: 8, kind: input, shape index: {}]   ;;  %s2523_s9 = inlined_call_operand.vmem [shape: f32[16,4], index: 9, kind: input, shape index: {}]   ;;  %s2524_s10 = inlined_call_operand.vmem [shape: f32[4,16], index: 10, kind: input, shape index: {}]   ;;  %s2525_s11 = inlined_call_operand.vmem [shape: f32[2,64,16], index: 11, kind: output, shape index: {}]  }
   0x1   :  { %16 = sst [smem:[#allocation3]] %s2522_s8 }
   0x2   :  { %17 = vsyncpa [#allocation5], 0 }
   0x3   :  { %19 = vsyncpa [#allocation5 + $0x1], 0  ;;  %s2029_s19 = smov 0   ;;  %s2031_s20 = smov 0  }
   0x4   :  { %s2033_s21 = smov 0   ;;  %s2035_s22 = smov 0  }
   0x5   :  { %s2037_s23 = smov 0   ;;  %s2039_s24 = smov 0  }
   0x6 LB: > { %s1582_s8 = sadd.s32 4294967295, %s1951_s24   ;;  %s37_s25 = sadd.s32 1, %s1947_s23  ;;  %s1951_s24 = sphi %s2039_s24, %s25_s24   ;;  %s1947_s23 = sphi %s2037_s23, %s2533_s23   ;;  %s1943_s22 = sphi %s2035_s22, %s2532_s22   ;;  %s1939_s21 = sphi %s2033_s21, %s2531_s21   ;;  %s1935_s20 = sphi %s2031_s20, %s2530_s20   ;;  %s1931_s19 = sphi %s2029_s19, %s2529_s19  }
   0x7   : > { %p39_p0 = scmp.ge.s32.totalorder %s37_s25, 2  ;;  %s46_s26 = sadd.s32 1, %s1939_s21 }
   0x8   : > { %p53_p1 = scmp.ne.s32.totalorder %s1939_s21, %s1935_s20  ;;  %p54_p2 = scmp.eq.s32.totalorder %s1951_s24, 0 }
   0x9   : > { %s2535_s25 = smov (%p39_p0, %s37_s25), 0  ;;  %p59_p4 = scmp.ne.s32.totalorder %s1935_s20, %s1931_s19 }
   0xa   : > { %p2065_p3 = por %p54_p2, %p53_p1  ;;  %s41_s28 = ssub.s32 %s1947_s23, %s2535_s25 }
   0xb   : > { %p60_p5 = scmp.eq.s32.totalorder %s1582_s8, 0  ;;  %p44_p6 = scmp.eq.s32.totalorder %s41_s28, 0 }
   0xc   : > { %p1806_p8 = scmp.lt.s32.totalorder %s1951_s24, 2  ;;  %s349_s12 = sand.u32 1, %s1939_s21  }
   0xd   : > { %p2072_p7 = por %p60_p5, %p59_p4  ;;  %s1634_s13 = sshll.u32 %s1947_s23, 10 }
   0xe   : > { %s2078_s30 = scalar_select %p44_p6, %s1939_s21, %s46_s26  }
   0xf   : > { %s1586_s14 = sshll.u32 %s349_s12, 6  ;;  %s2085_s17 = scalar_lea.hbm %s2514_s0, %s1634_s13 }
  0x10   : > { %s353_s18 = scalar_lea.vmem [#allocation4], %s1586_s14  ;;  %p2089_p9 = pnand %p1806_p8, %p2065_p3 }
  0x11   : > { %s362_s19 = sshll.u32 %s353_s18, 4  ;;  %s2095_s26 = scalar_lea.sflag [#allocation5], %s349_s12  ;;  %s2093_s19 = int_to_ptr.vmem [resolvable:$true] %s362_s19 }
  0x12   : > { %s1871_s28 = scalar_lea.hbm %s2085_s17, 1024  ;;  %p1873_p11 = pneg %p2089_p9 }
  0x13   : > { %p1872_p10 = scmp.ne.s32.totalorder %s2085_s17, %s1871_s28  ;;  %s1876_s14 = scalar_lea.hbm %s2514_s0, 2048 }
  0x14   : > { %p1877_p0 = scmp.lt.u32.totalorder %s2085_s17, %s2514_s0  ;;  %p1878_p1 = scmp.lt.u32.totalorder %s1876_s14, %s1871_s28 }
  0x15   : > { %p1874_p12 = pnand %p1873_p11, %p1872_p10  ;;  %p1880_p3 = scmp.lt.u32.totalorder %s1871_s28, %s2085_s17 }
  0x16   : > { %p1879_p2 = por %p1878_p1, %p1877_p0 }
  0x17   : > { %p1875_p13 = pneg %p1874_p12 }
  0x18   : > { %p1881_p4 = por %p1880_p3, %p1879_p2 }
  0x1a   : > { %p1882_p5 = pnand %p1881_p4, %p1875_p13 }
  0x1c   : > { %1885 = shalt.err (!%p1882_p5)
}
  0x1d   : > { %s1886_s12 = scalar_lea.vmem %s2093_s19, 1024  ;;  %s1953_s18 = smov [#allocation4]  }
  0x1e   : > { %p1887_p6 = scmp.ne.s32.totalorder %s2093_s19, %s1886_s12  ;;  %s1891_s13 = sshll.u32 %s1953_s18, 4  ;;  %s1892_s13 = int_to_ptr.vmem [resolvable:$false] %s1891_s13 }
  0x1f   : > { %s1893_s27 = scalar_lea.vmem %s1892_s13, 2048  ;;  %p1894_p12 = scmp.lt.s32.totalorder %s2093_s19, %s1892_s13 }
  0x20   : > { %p1889_p8 = pnand %p1887_p6, %p1873_p11  ;;  %p1895_p0 = scmp.lt.s32.totalorder %s1893_s27, %s1886_s12 }
  0x22   : > { %p1890_p10 = pneg %p1889_p8  ;;  %p1896_p1 = por %p1895_p0, %p1894_p12 }
  0x24   : > { %p1897_p2 = pnand %p1896_p1, %p1890_p10 }
  0x26   : > { %1900 = shalt.err (!%p1897_p2)
}
  0x27   : > { %s1954_s28 = smov 128   ;;  %s1955_s14 = smov 8  }
  0x28   : > { %1805 = dma.hbm_to_vmem [thread:$0]  (!%p2089_p9), %s2085_s17, 1024, %s2093_s19, %s2095_s26, %s1954_s28, %s1954_s28, %s1955_s14  }
  0x29   : > { %p1589_p11 = scmp.ge.s32.totalorder %s1951_s24, 1  ;;  %p370_p13 = scmp.lt.s32.totalorder %s1951_s24, 3 }
  0x2b   : > { %p371_p3 = pnand %p1589_p11, %p370_p13 }
  0x2c   : > { %s376_s15 = sand.u32 (!%p371_p3), 1, %s1935_s20  }
  0x2d   : > { %374 = sbr.rel (%p371_p3) target bundleno = 1235 (0x4d3), region = 64  ;;  %s1590_s16 = sshll.u32 (!%p371_p3), %s376_s15, 6 }
  0x2e   : > { %s377_s12 = scalar_lea.sflag (!%p371_p3), [#allocation5], %s376_s15  ;;  %s2126_s18 = scalar_lea.vmem (!%p371_p3), [#allocation4], %s1590_s16 }
  0x34   : > { %1926 = dma.done.wait (%p2072_p7), %s377_s12, 1024  }
  0x35   : > { %1928 = vsyncadd (%p2072_p7), %s377_s12, 4294966272  ;;  %v2133_v0 = vld [vmem:[%s2126_s18] sm:$0xff]  ;;  %s1956_s17 = smov 112   ;;  %s1957_s19 = smov 120   ;;  %v2140_v1 = vld [vmem:[%s2126_s18 + $0x8] sm:$0xff]  ;;  %vm674_vm0 = vcmask 64512  }
  0x36   : > { %474 = vrot.lane.b32.xlu1 %v2133_v0, %s1956_s17  ;;  %442 = vrot.lane.b32.xlu0 %v2133_v0, %s1957_s19  ;;  %v2147_v2 = vld [vmem:[%s2126_s18 + $0x10] sm:$0xff]  ;;  %s1958_s29 = smov 104   ;;  %v2154_v3 = vld [vmem:[%s2126_s18 + $0x18] sm:$0xff]  ;;  %s1959_s8 = smov 96   ;;  %vm819_vm1 = vcmask 523264   ;;  %vm993_vm4 = vcmask 130048  }
  0x37   : > { %v2169_v4 = vld [vmem:[%s2126_s18 + $0x20] sm:$0xff]  ;;  %v2176_v5 = vld [vmem:[%s2126_s18 + $0x28] sm:$0xff]  ;;  %s1960_s26 = smov 88   ;;  %s1961_s13 = smov 80   ;;  %v2199_v6 = vld [vmem:[%s2126_s18 + $0x30] sm:$0xff] }
  0x38   : > { %v666_v7 = vld [vmem:[%s2515_s1] sm:$0xff]  ;;  %s1962_s14 = smov 72   ;;  %v805_v10 = vld [vmem:[%s2516_s2 + $0x8] sm:$0xff]  ;;  %v806_v54 = vld [vmem:[%s2516_s2 + $0x10] sm:$0xff]  ;;  %p420_p7 = scmp.lt.s32.totalorder %s1943_s22, 1 }
  0x39   : > { %1685 = vmatprep.subr.mxu1 %v666_v7  ;;  %v2213_v8 = vld [vmem:[%s2126_s18 + $0x38] sm:$0xff]  ;;  %v809_v62 = vld [vmem:[%s2516_s2 + $0x28] sm:$0xff] }
  0x3a   : > { %476 = vrot.lane.b32.xlu1 %v2140_v1, %s1956_s17  ;;  %444 = vrot.lane.b32.xlu0 %v2140_v1, %s1957_s19  ;;  %v804_v9 = vld [vmem:[%s2516_s2] sm:$0xff]  ;;  %v807_v55 = vld [vmem:[%s2516_s2 + $0x18] sm:$0xff]  ;;  %s2537_s22 = smov (!%p420_p7, %s1943_s22), 1 }
  0x3b   : > { %1686 = vmatpush3.msra.mxu1 %v666_v7  ;;  %v2253_v11 = vpack.c.bf16 %v805_v10, %v804_v9  ;;  %v1773_v60 = vpack.c.bf16 %v807_v55, %v806_v54  ;;  %v808_v61 = vld [vmem:[%s2516_s2 + $0x20] sm:$0xff]  ;;  %v810_v10 = vld [vmem:[%s2516_s2 + $0x30] sm:$0xff] }
  0x3c   : > { %v1777_v9 = vpack.c.bf16 %v809_v62, %v808_v61 }
  0x3d   : > { %1770 = vmatprep.subr.bf16.mxu1 %v2253_v11 }
  0x3e   : > { %506 = vrot.lane.b32.xlu1 %v2133_v0, %s1958_s29  ;;  %446 = vrot.lane.b32.xlu0 %v2147_v2, %s1957_s19 }
  0x42   : > { %508 = vrot.lane.b32.xlu1 %v2140_v1, %s1958_s29  ;;  %448 = vrot.lane.b32.xlu0 %v2154_v3, %s1957_s19 }
  0x46   : > { %538 = vrot.lane.b32.xlu1 %v2133_v0, %s1959_s8  ;;  %478 = vrot.lane.b32.xlu0 %v2147_v2, %s1956_s17 }
  0x4a   : > { %540 = vrot.lane.b32.xlu1 %v2140_v1, %s1959_s8  ;;  %480 = vrot.lane.b32.xlu0 %v2154_v3, %s1956_s17 }
  0x4e   : > { %510 = vrot.lane.b32.xlu1 %v2147_v2, %s1958_s29  ;;  %450 = vrot.lane.b32.xlu0 %v2169_v4, %s1957_s19 }
  0x52   : > { %452 = vrot.lane.b32.xlu1 %v2176_v5, %s1957_s19  ;;  %570 = vrot.lane.b32.xlu0 %v2133_v0, %s1960_s26 }
  0x56   : > { %572 = vrot.lane.b32.xlu1 %v2140_v1, %s1960_s26  ;;  %512 = vrot.lane.b32.xlu0 %v2154_v3, %s1958_s29 }
  0x5a   : > { %542 = vrot.lane.b32.xlu1 %v2147_v2, %s1959_s8  ;;  %482 = vrot.lane.b32.xlu0 %v2169_v4, %s1956_s17 }
  0x5e   : > { %484 = vrot.lane.b32.xlu1 %v2176_v5, %s1956_s17  ;;  %602 = vrot.lane.b32.xlu0 %v2133_v0, %s1961_s13 }
  0x62   : > { %604 = vrot.lane.b32.xlu1 %v2140_v1, %s1961_s13  ;;  %544 = vrot.lane.b32.xlu0 %v2154_v3, %s1959_s8 }
  0x66   : > { %514 = vrot.lane.b32.xlu1 %v2169_v4, %s1958_s29  ;;  %454 = vrot.lane.b32.xlu0 %v2199_v6, %s1957_s19 }
  0x6a   : > { %634 = vrot.lane.b32.xlu1 %v2133_v0, %s1962_s14  ;;  %574 = vrot.lane.b32.xlu0 %v2147_v2, %s1960_s26 }
  0x6e   : > { %516 = vrot.lane.b32.xlu1 %v2176_v5, %s1958_s29  ;;  %456 = vrot.lane.b32.xlu0 %v2213_v8, %s1957_s19 }
  0x72   : > { %636 = vrot.lane.b32.xlu1 %v2140_v1, %s1962_s14  ;;  %576 = vrot.lane.b32.xlu0 %v2154_v3, %s1960_s26 }
  0x76   : > { %546 = vrot.lane.b32.xlu1 %v2169_v4, %s1959_s8  ;;  %486 = vrot.lane.b32.xlu0 %v2199_v6, %s1956_s17 }
  0x7a   : > { %488 = vrot.lane.b32.xlu1 %v2213_v8, %s1956_s17  ;;  %606 = vrot.lane.b32.xlu0 %v2147_v2, %s1961_s13 }
  0x7e   : > { %608 = vrot.lane.b32.xlu1 %v2154_v3, %s1961_s13  ;;  %548 = vrot.lane.b32.xlu0 %v2176_v5, %s1959_s8 }
  0x82   : > { %578 = vrot.lane.b32.xlu1 %v2169_v4, %s1960_s26  ;;  %518 = vrot.lane.b32.xlu0 %v2199_v6, %s1958_s29 }
  0x86   : > { %520 = vrot.lane.b32.xlu1 %v2213_v8, %s1958_s29  ;;  %638 = vrot.lane.b32.xlu0 %v2147_v2, %s1962_s14 }
  0x8a   : > { %640 = vrot.lane.b32.xlu1 %v2154_v3, %s1962_s14  ;;  %580 = vrot.lane.b32.xlu0 %v2176_v5, %s1960_s26 }
  0x8e   : > { %610 = vrot.lane.b32.xlu1 %v2169_v4, %s1961_s13  ;;  %550 = vrot.lane.b32.xlu0 %v2199_v6, %s1959_s8 }
  0x92   : > { %612 = vrot.lane.b32.xlu1 %v2176_v5, %s1961_s13  ;;  %552 = vrot.lane.b32.xlu0 %v2213_v8, %s1959_s8  ;;  %s1635_s8 = sshll.u32 %s2537_s22, 6 }
  0x96   : > { %642 = vrot.lane.b32.xlu1 %v2169_v4, %s1962_s14  ;;  %582 = vrot.lane.b32.xlu0 %v2199_v6, %s1960_s26 }
  0x9a   : > { %644 = vrot.lane.b32.xlu1 %v2176_v5, %s1962_s14  ;;  %584 = vrot.lane.b32.xlu0 %v2213_v8, %s1960_s26 }
  0x9e   : > { %616 = vrot.lane.b32.xlu1 %v2213_v8, %s1961_s13  ;;  %614 = vrot.lane.b32.xlu0 %v2199_v6, %s1961_s13  ;;  %s425_s13 = sld [smem:[#allocation3]] }
  0xa2   : > { %648 = vrot.lane.b32.xlu1 %v2213_v8, %s1962_s14  ;;  %646 = vrot.lane.b32.xlu0 %v2199_v6, %s1962_s14  ;;  %s2444_s14 = scalar_lea.vmem %s2525_s11, %s1635_s8 }
  0xa8   : > { %v475_v12 = vpop.permute.xlu1 %474  ;;  %v443_v13 = vpop.permute.xlu0 %442 }
  0xa9   : > { %v466_v32 = vmax.f32 %v2133_v0, %v443_v13 }
  0xab   : > { %v498_v35 = vmax.f32 %v466_v32, %v475_v12  ;;  %v811_v12 = vld [vmem:[%s2516_s2 + $0x38] sm:$0xff] }
  0xac   : > { %v477_v14 = vpop.permute.xlu1 %476  ;;  %v445_v15 = vpop.permute.xlu0 %444 }
  0xad   : > { %v467_v39 = vmax.f32 %v2140_v1, %v445_v15 }
  0xaf   : > { %v499_v44 = vmax.f32 %v467_v39, %v477_v14 }
  0xb0   : > { %v507_v16 = vpop.permute.xlu1 %506  ;;  %v2280_v17 = vpop.permute.xlu0 %446 }
  0xb1   : > { %v530_v38 = vmax.f32 %v498_v35, %v507_v16  ;;  %v468_v15 = vmax.f32 %v2147_v2, %v2280_v17  ;;  %v1781_v16 = vpack.c.bf16 %v811_v12, %v810_v10 }
  0xb4   : > { %v509_v18 = vpop.permute.xlu1 %508  ;;  %v2282_v19 = vpop.permute.xlu0 %448 }
  0xb5   : > { %v531_v48 = vmax.f32 %v499_v44, %v509_v18 }
  0xb8   : > { %v539_v20 = vpop.permute.xlu1 %538  ;;  %v479_v21 = vpop.permute.xlu0 %478 }
  0xb9   : > { %v562_v40 = vmax.f32 %v530_v38, %v539_v20  ;;  %v500_v18 = vmax.f32 %v468_v15, %v479_v21 }
  0xbc   : > { %v541_v22 = vpop.permute.xlu1 %540  ;;  %v2284_v23 = vpop.permute.xlu0 %480 }
  0xbd   : > { %v563_v50 = vmax.f32 %v531_v48, %v541_v22  ;;  %v469_v22 = vmax.f32 %v2154_v3, %v2282_v19 }
  0xc0   : > { %v2286_v24 = vpop.permute.xlu1 %510  ;;  %v2288_v25 = vpop.permute.xlu0 %450 }
  0xc4   : > { %v2290_v26 = vpop.permute.xlu1 %452  ;;  %v571_v27 = vpop.permute.xlu0 %570 }
  0xc5   : > { %v594_v43 = vmax.f32 %v562_v40, %v571_v27  ;;  %v532_v27 = vmax.f32 %v500_v18, %v2286_v24 }
  0xc8   : > { %v573_v28 = vpop.permute.xlu1 %572  ;;  %v2292_v29 = vpop.permute.xlu0 %512 }
  0xc9   : > { %v595_v53 = vmax.f32 %v563_v50, %v573_v28  ;;  %v501_v28 = vmax.f32 %v469_v22, %v2284_v23  ;;  %v470_v23 = vmax.f32 %v2169_v4, %v2288_v25 }
  0xcb   : > { %v533_v17 = vmax.f32 %v501_v28, %v2292_v29  ;;  %v991_v28 = vld [vmem:[%s2520_s6] sm:$0xff] }
  0xcc   : > { %v543_v30 = vpop.permute.xlu1 %542  ;;  %v2294_v31 = vpop.permute.xlu0 %482 }
  0xcd   : > { %v564_v32 = vmax.f32 %v532_v27, %v543_v30 }
  0xd0   : > { %v2297_v33 = vpop.permute.xlu1 %484  ;;  %v603_v34 = vpop.permute.xlu0 %602 }
  0xd1   : > { %v626_v45 = vmax.f32 %v594_v43, %v603_v34 }
  0xd4   : > { %v605_v36 = vpop.permute.xlu1 %604  ;;  %v545_v37 = vpop.permute.xlu0 %544 }
  0xd5   : > { %v627_v56 = vmax.f32 %v595_v53, %v605_v36  ;;  %v565_v38 = vmax.f32 %v533_v17, %v545_v37  ;;  %v1602_v17 = vld [vmem:[%s2518_s4] ss:$0 sm:$0xff] }
  0xd8   : > { %v2300_v41 = vpop.permute.xlu1 %514  ;;  %v2302_v42 = vpop.permute.xlu0 %454 }
  0xdc   : > { %v635_v46 = vpop.permute.xlu1 %634  ;;  %v575_v47 = vpop.permute.xlu0 %574 }
  0xdd   : > { %v658_v49 = vmax.f32 %v626_v45, %v635_v46  ;;  %v596_v36 = vmax.f32 %v564_v32, %v575_v47  ;;  %v502_v46 = vmax.f32 %v470_v23, %v2294_v31  ;;  %v471_v47 = vmax.f32 %v2176_v5, %v2290_v26 }
  0xdf   : > { %1687 = vmatprep.mubr.msk.f32.mxu1 %vm674_vm0, %v658_v49  ;;  %v534_v48 = vmax.f32 %v502_v46, %v2300_v41  ;;  %v503_v49 = vmax.f32 %v471_v47, %v2297_v33 }
  0xe0   : > { %v2305_v51 = vpop.permute.xlu1 %516  ;;  %v2307_v52 = vpop.permute.xlu0 %456 }
  0xe1   : > { %v535_v55 = vmax.f32 %v503_v49, %v2305_v51  ;;  %v473_v26 = vmax.f32 %v2213_v8, %v2307_v52 }
  0xe4   : > { %v637_v57 = vpop.permute.xlu1 %636  ;;  %v577_v58 = vpop.permute.xlu0 %576 }
  0xe5   : > { %v659_v59 = vmax.f32 %v627_v56, %v637_v57  ;;  %v597_v43 = vmax.f32 %v565_v38, %v577_v58 }
  0xe7   : > { %1688 = vmatmul.mubr.msk.f32.vlgmr.msra.gmra.mrb[0].mxu1 %vm674_vm0, %v659_v59  ;;  %v472_v59 = vmax.f32 %v2199_v6, %v2302_v42 }
  0xe8   : > { %v547_v63 = vpop.permute.xlu1 %546  ;;  %v487_v7 = vpop.permute.xlu0 %486  ;;  %1772 = vmatpush3.bf16.msra.mxu1 %v2253_v11 }
  0xe9   : > { %1774 = vmatprep.subr.bf16.mxu1 %v1773_v60  ;;  %v566_v50 = vmax.f32 %v534_v48, %v547_v63  ;;  %v504_v61 = vmax.f32 %v472_v59, %v487_v7 }
  0xec   : > { %v489_v13 = vpop.permute.xlu1 %488  ;;  %v607_v14 = vpop.permute.xlu0 %606  ;;  %1776 = vmatpush3.bf16.msra.mxu1 %v1773_v60 }
  0xed   : > { %1778 = vmatprep.subr.bf16.mxu1 %v1777_v9  ;;  %v628_v21 = vmax.f32 %v596_v36, %v607_v14  ;;  %v505_v33 = vmax.f32 %v473_v26, %v489_v13 }
  0xf0   : > { %v609_v11 = vpop.permute.xlu1 %608  ;;  %v549_v20 = vpop.permute.xlu0 %548  ;;  %1780 = vmatpush3.bf16.msra.mxu1 %v1777_v9 }
  0xf1   : > { %1782 = vmatprep.subr.bf16.mxu1 %v1781_v16  ;;  %v629_v45 = vmax.f32 %v597_v43, %v609_v11  ;;  %v567_v56 = vmax.f32 %v535_v55, %v549_v20 }
  0xf4   : > { %v579_v34 = vpop.permute.xlu1 %578  ;;  %v519_v35 = vpop.permute.xlu0 %518  ;;  %1784 = vmatpush3.bf16.msra.mxu1 %v1781_v16 }
  0xf5   : > { %v598_v25 = vmax.f32 %v566_v50, %v579_v34  ;;  %v536_v9 = vmax.f32 %v504_v61, %v519_v35 }
  0xf8   : > { %v521_v39 = vpop.permute.xlu1 %520  ;;  %v639_v40 = vpop.permute.xlu0 %638 }
  0xf9   : > { %v660_v44 = vmax.f32 %v628_v21, %v639_v40  ;;  %v537_v10 = vmax.f32 %v505_v33, %v521_v39  ;;  %v2384_v39 = vstv %s425_s13 }
  0xfb   : > { %1690 = vmatprep.mubr.msk.f32.mxu1 %vm674_vm0, %v660_v44 }
  0xfc   : > { %v641_v19 = vpop.permute.xlu1 %640  ;;  %v581_v24 = vpop.permute.xlu0 %580 }
  0xfd   : > { %v661_v30 = vmax.f32 %v629_v45, %v641_v19  ;;  %v599_v60 = vmax.f32 %v567_v56, %v581_v24 }
  0xff   : > { %1691 = vmatmul.mubr.msk.f32.gmra.mrb[2].mxu1 %vm674_vm0, %v661_v30 }
 0x100   : > { %v611_v29 = vpop.permute.xlu1 %610  ;;  %v551_v37 = vpop.permute.xlu0 %550 }
 0x101   : > { %v630_v57 = vmax.f32 %v598_v25, %v611_v29  ;;  %v568_v14 = vmax.f32 %v536_v9, %v551_v37  ;;  %v1593_v37 = vld [vmem:[%s2517_s3] ss:$0 sm:$0xff] }
 0x104   : > { %v613_v53 = vpop.permute.xlu1 %612  ;;  %v553_v54 = vpop.permute.xlu0 %552 }
 0x105   : > { %v631_v62 = vmax.f32 %v599_v60, %v613_v53  ;;  %v569_v15 = vmax.f32 %v537_v10, %v553_v54 }
 0x108   : > { %v643_v31 = vpop.permute.xlu1 %642  ;;  %v583_v58 = vpop.permute.xlu0 %582 }
 0x109   : > { %v662_v41 = vmax.f32 %v630_v57, %v643_v31  ;;  %v600_v18 = vmax.f32 %v568_v14, %v583_v58 }
 0x10b   : > { %1693 = vmatprep.mubr.msk.f32.mxu1 %vm674_vm0, %v662_v41 }
 0x10c   : > { %v645_v63 = vpop.permute.xlu1 %644  ;;  %v585_v51 = vpop.permute.xlu0 %584 }
 0x10d   : > { %v663_v12 = vmax.f32 %v631_v62, %v645_v63  ;;  %v601_v52 = vmax.f32 %v569_v15, %v585_v51 }
 0x10f   : > { %1694 = vmatmul.mubr.msk.f32.gmra.mrb[4].mxu1 %vm674_vm0, %v663_v12 }
 0x110   : > { %v617_v42 = vpop.permute.xlu1 %616  ;;  %v615_v16 = vpop.permute.xlu0 %614 }
 0x111   : > { %v633_v11 = vmax.f32 %v601_v52, %v617_v42  ;;  %v632_v20 = vmax.f32 %v600_v18, %v615_v16 }
 0x114   : > { %v649_v7 = vpop.permute.xlu1 %648  ;;  %v647_v13 = vpop.permute.xlu0 %646 }
 0x115   : > { %v665_v22 = vmax.f32 %v633_v11, %v649_v7  ;;  %v664_v27 = vmax.f32 %v632_v20, %v647_v13 }
 0x117   : > { %1696 = vmatprep.mubr.msk.f32.mxu1 %vm674_vm0, %v664_v27 }
 0x118   : > { %1697 = vmatmul.mubr.msk.f32.gmra.mrb[6].mxu1 %vm674_vm0, %v665_v22 }
 0x119   : > { %1715 = vmatprep.mubr.msk.f32.mxu1 %vm819_vm1, %v2133_v0  ;;  %v992_v0 = vld [vmem:[%s2520_s6 + $0x8] sm:$0xff] }
 0x11c   : > { %1716 = vmatmul.mubr.msk.f32.vlgmr.msra.gmra.mrb[8].mxu1 %vm819_vm1, %v2140_v1  ;;  %v1785_v1 = vpack.c.bf16 %v992_v0, %v991_v28 }
 0x11d   : > { %1718 = vmatprep.mubr.msk.f32.mxu1 %vm819_vm1, %v2147_v2  ;;  %v990_v2 = vld [vmem:[%s2519_s5] sm:$0xff] }
 0x11e   : > { %1786 = vmatprep.subr.bf16.mxu0 %v1785_v1 }
 0x11f   : > { %1788 = vmatpush3.bf16.msra.mxu0 %v1785_v1 }
 0x120   : > { %1719 = vmatmul.mubr.msk.f32.gmra.mrb[10].mxu1 %vm819_vm1, %v2154_v3  ;;  %1743 = vmatprep.subr.mxu0 %v990_v2 }
 0x121   : > { %1721 = vmatprep.mubr.msk.f32.mxu1 %vm819_vm1, %v2169_v4 }
 0x124   : > { %1722 = vmatmul.mubr.msk.f32.gmra.mrb[12].mxu1 %vm819_vm1, %v2176_v5 }
 0x125   : > { %1724 = vmatprep.mubr.msk.f32.mxu1 %vm819_vm1, %v2199_v6 }
 0x128   : > { %1725 = vmatmul.mubr.msk.f32.gmra.mrb[14].mxu1 %vm819_vm1, %v2213_v8 }
 0x1ba   : > { %v1689_v3 = vpop.f32.mrb[0].mxu1 }
 0x1bb   : > { %v765_v4 = vpop.f32.mrb[1].mxu1  ;;  %v771_v41 = vadd.f32 %v1689_v3, %v1593_v37 }
 0x1bc   : > { %v766_v55 = vadd.f32 %v1593_v37, %v765_v4 }
 0x1bd   : > { %v951_v10 = vmul.f32 %v2384_v39, %v771_v41  ;;  %vm942_vm12 = vcmp.gt.f32.partialorder %v771_v41, 0.0 }
 0x1be   : > { %v950_v61 = vmul.f32 %v2384_v39, %v766_v55  ;;  %vm941_vm11 = vcmp.gt.f32.partialorder %v766_v55, 0.0 }
 0x1bf   : > { %v959_v18 = vsel %vm942_vm12, %v771_v41, %v951_v10 }
 0x1c0   : > { %v958_v16 = vsel %vm941_vm11, %v766_v55, %v950_v61 }
 0x1d2   : > { %v2371_v5 = vpop.f32.mrb[2].mxu1 }
 0x1d3   : > { %v775_v6 = vpop.f32.mrb[3].mxu1  ;;  %v781_v12 = vadd.f32 %v2371_v5, %v1593_v37 }
 0x1d4   : > { %v776_v63 = vadd.f32 %v1593_v37, %v775_v6  ;;  %v1963_v6 = vmov 0.0  }
 0x1d5   : > { %v953_v52 = vmul.f32 %v2384_v39, %v781_v12  ;;  %vm944_vm14 = vcmp.gt.f32.partialorder %v781_v12, 0.0  ;;  %1764 = vmatprep.subr.mxu1 %v1963_v6 }
 0x1d6   : > { %v952_v15 = vmul.f32 %v2384_v39, %v776_v63  ;;  %vm943_vm13 = vcmp.gt.f32.partialorder %v776_v63, 0.0 }
 0x1d7   : > { %v961_v28 = vsel %vm944_vm14, %v781_v12, %v953_v52 }
 0x1d8   : > { %v960_v13 = vsel %vm943_vm13, %v776_v63, %v952_v15 }
 0x1e2   : > { %v2373_v8 = vpop.f32.mrb[4].mxu1 }
 0x1e3   : > { %v2375_v32 = vpop.f32.mrb[5].mxu1  ;;  %v791_v11 = vadd.f32 %v2373_v8, %v1593_v37  ;;  %v1313_v8 = vld [vmem:[%s2523_s9] sm:$0xff] }
 0x1e4   : > { %v786_v42 = vadd.f32 %v1593_v37, %v2375_v32  ;;  %v1314_v32 = vld [vmem:[%s2523_s9 + $0x8] sm:$0xff] }
 0x1e5   : > { %v955_v22 = vmul.f32 %v2384_v39, %v791_v11  ;;  %vm946_vm1 = vcmp.gt.f32.partialorder %v791_v11, 0.0 }
 0x1e6   : > { %v954_v20 = vmul.f32 %v2384_v39, %v786_v42  ;;  %vm945_vm15 = vcmp.gt.f32.partialorder %v786_v42, 0.0 }
 0x1e7   : > { %v963_v3 = vsel %vm946_vm1, %v791_v11, %v955_v22 }
 0x1e8   : > { %v962_v1 = vsel %vm945_vm15, %v786_v42, %v954_v20 }
 0x1eb   : > { %v2377_v34 = vpop.f32.mrb[6].mxu1 }
 0x1ec   : > { %v2379_v35 = vpop.f32.mrb[7].mxu1  ;;  %v801_v27 = vadd.f32 %v2377_v34, %v1593_v37  ;;  %v1964_v34 = vmov 0.0|0.0  }
 0x1ed   : > { %v796_v7 = vadd.f32 %v1593_v37, %v2379_v35  ;;  %v1790_v35 = vpack.c.bf16 %v1314_v32, %v1313_v8 }
 0x1ef   : > { %v1717_v36 = vpop.f32.mrb[8].mxu1  ;;  %v956_v0 = vmul.f32 %v2384_v39, %v796_v7 }
 0x1f0   : > { %v908_v38 = vadd.f32 %v1717_v36, %v1602_v17  ;;  %v902_v21 = vpop.f32.mrb[9].mxu1  ;;  %v1627_v36 = vld [vmem:[%s2521_s7] ss:$0 sm:$0xff] }
 0x1f1   : > { %v903_v40 = vadd.f32 %v1602_v17, %v902_v21 }
 0x1f2   : > { %v975_v43 = vmul.f32 %v2384_v39, %v908_v38  ;;  %vm967_vm2 = vcmp.gt.f32.partialorder %v908_v38, 0.0 }
 0x1f3   : > { %v1720_v44 = vpop.f32.mrb[10].mxu1  ;;  %vm966_vm3 = vcmp.gt.f32.partialorder %v903_v40, 0.0  ;;  %v974_v45 = vmul.f32 %v2384_v39, %v903_v40 }
 0x1f4   : > { %v918_v19 = vadd.f32 %v1720_v44, %v1602_v17  ;;  %v912_v24 = vpop.f32.mrb[11].mxu1  ;;  %v983_v29 = vsel %vm967_vm2, %v908_v38, %v975_v43  ;;  %vm947_vm2 = vcmp.gt.f32.partialorder %v796_v7, 0.0 }
 0x1f5   : > { %v913_v23 = vadd.f32 %v1602_v17, %v912_v24  ;;  %v982_v30 = vsel %vm966_vm3, %v903_v40, %v974_v45  ;;  %vm948_vm3 = vcmp.gt.f32.partialorder %v801_v27, 0.0  ;;  %v964_v4 = vsel %vm947_vm2, %v796_v7, %v956_v0 }
 0x1f6   : > { %v977_v46 = vmul.f32 %v2384_v39, %v918_v19  ;;  %1731 = vmatprep.mubr.msk.f32.mxu0 %vm993_vm4, %v982_v30  ;;  %vm969_vm5 = vcmp.gt.f32.partialorder %v918_v19, 0.0 }
 0x1f7   : > { %vm968_vm6 = vcmp.gt.f32.partialorder %v913_v23, 0.0  ;;  %v976_v47 = vmul.f32 %v2384_v39, %v913_v23  ;;  %v1723_v48 = vpop.f32.mrb[12].mxu1  ;;  %1732 = vmatmul.mubr.msk.f32.vlgmr.msra.gmra.mrb[0].mxu0 %vm993_vm4, %v983_v29 }
 0x1f8   : > { %v928_v49 = vadd.f32 %v1723_v48, %v1602_v17  ;;  %1744 = vmatpush3.msra.mxu0 %v990_v2  ;;  %v922_v50 = vpop.f32.mrb[13].mxu1  ;;  %v985_v56 = vsel %vm969_vm5, %v918_v19, %v977_v46  ;;  %v957_v2 = vmul.f32 %v2384_v39, %v801_v27  ;;  %vm1271_vm5 = vcmask 122880  }
 0x1f9   : > { %v923_v53 = vadd.f32 %v1602_v17, %v922_v50  ;;  %v984_v54 = vsel %vm968_vm6, %v913_v23, %v976_v47  ;;  %1272 = vst.msk [vmem:[#allocation2] sm:$0x1] %vm1271_vm5, %v1963_v6  ;;  %1789 = vmatprep.subr.bf16.mxu0 %v1964_v34  ;;  %vm1394_vm6 = vcmask 1043456  }
 0x1fa   : > { %v979_v25 = vmul.f32 %v2384_v39, %v928_v49  ;;  %1734 = vmatprep.mubr.msk.f32.mxu0 %vm993_vm4, %v984_v54  ;;  %vm971_vm7 = vcmp.gt.f32.partialorder %v928_v49, 0.0  ;;  %v965_v5 = vsel %vm948_vm3, %v801_v27, %v957_v2  ;;  %v1482_v27 = vlaneseq }
 0x1fb   : > { %vm970_vm8 = vcmp.gt.f32.partialorder %v923_v53, 0.0  ;;  %v978_v57 = vmul.f32 %v2384_v39, %v923_v53  ;;  %v1726_v31 = vpop.f32.mrb[14].mxu1  ;;  %1735 = vmatmul.mubr.msk.f32.gmra.mrb[2].mxu0 %vm993_vm4, %v985_v56 }
 0x1fc   : > { %v938_v58 = vadd.f32 %v1726_v31, %v1602_v17  ;;  %v932_v59 = vpop.f32.mrb[15].mxu1  ;;  %v987_v62 = vsel %vm971_vm7, %v928_v49, %v979_v25  ;;  %vm1390_vm7 = vcmask 31744  }
 0x1fd   : > { %v933_v26 = vadd.f32 %v1602_v17, %v932_v59  ;;  %v986_v60 = vsel %vm970_vm8, %v923_v53, %v978_v57  ;;  %v1389_v17 = vld [vmem:[%s2524_s10] sm:$0xf] }
 0x1fe   : > { %v981_v33 = vmul.f32 %v2384_v39, %v938_v58  ;;  %1737 = vmatprep.mubr.msk.f32.mxu0 %vm993_vm4, %v986_v60  ;;  %vm973_vm9 = vcmp.gt.f32.partialorder %v938_v58, 0.0  ;;  %1765 = vmatpush3.msk.msra.mxu1 %vm1394_vm6, %v1389_v17 }
 0x1ff   : > { %vm972_vm10 = vcmp.gt.f32.partialorder %v933_v26, 0.0  ;;  %v980_v51 = vmul.f32 %v2384_v39, %v933_v26  ;;  %1738 = vmatmul.mubr.msk.f32.gmra.mrb[4].mxu0 %vm993_vm4, %v987_v62 }
 0x200   : > { %v989_v14 = vsel %vm973_vm9, %v938_v58, %v981_v33  ;;  %v1273_v10 = vld [vmem:[#allocation2] sm:$0x1] }
 0x201   : > { %v988_v9 = vsel %vm972_vm10, %v933_v26, %v980_v51 }
 0x202   : > { %1740 = vmatprep.mubr.msk.f32.mxu0 %vm993_vm4, %v988_v9 }
 0x203   : > { %1741 = vmatmul.mubr.msk.f32.gmra.mrb[6].mxu0 %vm993_vm4, %v989_v14 }
 0x204   : > { %1745 = vmatprep.mubr.msk.f32.mxu0 %vm674_vm0, %v958_v16 }
 0x207   : > { %1746 = vmatmul.mubr.msk.f32.vlgmr.msra.gmra.mrb[0].mxu0 %vm674_vm0, %v959_v18 }
 0x208   : > { %1748 = vmatprep.mubr.msk.f32.mxu0 %vm674_vm0, %v960_v13  ;;  %1791 = vmatpush3.bf16.msra.mxu0 %v1790_v35 }
 0x20b   : > { %1749 = vmatmul.mubr.msk.f32.gmra.mrb[2].mxu0 %vm674_vm0, %v961_v28  ;;  %v1483_v28 = vshrl.u32 %v1482_v27, 7 }
 0x20c   : > { %1751 = vmatprep.mubr.msk.f32.mxu0 %vm674_vm0, %v962_v1 }
 0x20d   : > { %v1484_v0 = vsub.s32 0, %v1483_v28 }
 0x20f   : > { %1752 = vmatmul.mubr.msk.f32.gmra.mrb[4].mxu0 %vm674_vm0, %v963_v3 }
 0x210   : > { %1754 = vmatprep.mubr.msk.f32.mxu0 %vm674_vm0, %v964_v4 }
 0x213   : > { %1755 = vmatmul.mubr.msk.f32.gmra.mrb[6].mxu0 %vm674_vm0, %v965_v5  ;;  %vm1965_vm0 = vmmov 0  }
 0x214   : > { %1761 = vmatprep.mubr.msk.f32.mxu0 %vm1965_vm0, %v1963_v6  ;;  %1766 = vmatprep.mubr.msk.f32.mxu1 %vm1965_vm0, %v1963_v6 }
 0x2da   : > { %v1747_v38 = vpop.f32.mrb[0].mxu0 }
 0x2db   : > { %v1260_v21 = vadd.f32 %v1747_v38, %v1627_v36  ;;  %v1213_v39 = vpop.f32.mrb[1].mxu0 }
 0x2dc   : > { %v1259_v40 = vadd.f32 %v1627_v36, %v1213_v39 }
 0x2dd   : > { %v1275_v43 = vsel %vm993_vm4, %v1260_v21, 0.0  ;;  %1301 = vst.msk [vmem:[%s2444_s14 + $0x8] sm:$0xff] %vm993_vm4, %v1260_v21 }
 0x2de   : > { %v1274_v44 = vsel %vm993_vm4, %v1259_v40, 0.0  ;;  %1300 = vst.msk [vmem:[%s2444_s14] sm:$0xff] %vm993_vm4, %v1259_v40  ;;  %v1750_v45 = vpop.f32.mrb[2].mxu0 }
 0x2df   : > { %v1276_v19 = vadd.f32 %v1275_v43, %v1274_v44  ;;  %v1262_v24 = vadd.f32 %v1750_v45, %v1627_v36  ;;  %v1223_v23 = vpop.f32.mrb[3].mxu0 }
 0x2e0   : > { %v1261_v30 = vadd.f32 %v1627_v36, %v1223_v23 }
 0x2e1   : > { %1303 = vst.msk [vmem:[%s2444_s14 + $0x18] sm:$0xff] %vm993_vm4, %v1262_v24  ;;  %v1279_v49 = vsel %vm993_vm4, %v1262_v24, 0.0 }
 0x2e2   : > { %v1277_v46 = vsel %vm993_vm4, %v1261_v30, 0.0  ;;  %1302 = vst.msk [vmem:[%s2444_s14 + $0x10] sm:$0xff] %vm993_vm4, %v1261_v30  ;;  %v1753_v29 = vpop.f32.mrb[4].mxu0 }
 0x2e3   : > { %v1278_v37 = vadd.f32 %v1277_v46, %v1276_v19  ;;  %v1264_v47 = vadd.f32 %v1753_v29, %v1627_v36  ;;  %v1233_v48 = vpop.f32.mrb[5].mxu0 }
 0x2e4   : > { %v1263_v50 = vadd.f32 %v1627_v36, %v1233_v48  ;;  %v1475_v2 = vld [vmem:[%s2444_s14 + $0x8] sm:$0xff] }
 0x2e5   : > { %1305 = vst.msk [vmem:[%s2444_s14 + $0x28] sm:$0xff] %vm993_vm4, %v1264_v47  ;;  %v1280_v53 = vadd.f32 %v1279_v49, %v1278_v37  ;;  %v1283_v31 = vsel %vm993_vm4, %v1264_v47, 0.0  ;;  %v1474_v3 = vld [vmem:[%s2444_s14] sm:$0xff] }
 0x2e6   : > { %v1281_v54 = vsel %vm993_vm4, %v1263_v50, 0.0  ;;  %1304 = vst.msk [vmem:[%s2444_s14 + $0x20] sm:$0xff] %vm993_vm4, %v1263_v50  ;;  %v1756_v55 = vpop.f32.mrb[6].mxu0 }
 0x2e7   : > { %v1282_v25 = vadd.f32 %v1281_v54, %v1280_v53  ;;  %v1266_v56 = vadd.f32 %v1756_v55, %v1627_v36  ;;  %v1243_v57 = vpop.f32.mrb[7].mxu0 }
 0x2e8   : > { %v1265_v58 = vadd.f32 %v1627_v36, %v1243_v57  ;;  %v1477_v5 = vld [vmem:[%s2444_s14 + $0x18] sm:$0xff] }
 0x2e9   : > { %1307 = vst.msk [vmem:[%s2444_s14 + $0x38] sm:$0xff] %vm993_vm4, %v1266_v56  ;;  %v1284_v59 = vadd.f32 %v1283_v31, %v1282_v25  ;;  %v1287_v41 = vsel %vm993_vm4, %v1266_v56, 0.0  ;;  %v1476_v6 = vld [vmem:[%s2444_s14 + $0x10] sm:$0xff] }
 0x2ea   : > { %v1285_v26 = vsel %vm993_vm4, %v1265_v58, 0.0  ;;  %1306 = vst.msk [vmem:[%s2444_s14 + $0x30] sm:$0xff] %vm993_vm4, %v1265_v58 }
 0x2eb   : > { %v1286_v60 = vadd.f32 %v1285_v26, %v1284_v59 }
 0x2ec   : > { %v1479_v8 = vld [vmem:[%s2444_s14 + $0x28] sm:$0xff] }
 0x2ed   : > { %v1288_v61 = vadd.f32 %v1287_v41, %v1286_v60  ;;  %v1478_v32 = vld [vmem:[%s2444_s14 + $0x20] sm:$0xff] }
 0x2ef   : > { %v1289_v33 = vrot.slane %v1288_v61, 4 }
 0x2f0   : > { %v1481_v34 = vld [vmem:[%s2444_s14 + $0x38] sm:$0xff] }
 0x2f1   : > { %v1290_v62 = vadd.f32 %v1289_v33, %v1288_v61  ;;  %v1480_v35 = vld [vmem:[%s2444_s14 + $0x30] sm:$0xff] }
 0x2f3   : > { %v1291_v63 = vrot.slane %v1290_v62, 2 }
 0x2f5   : > { %v1292_v51 = vadd.f32 %v1291_v63, %v1290_v62 }
 0x2f7   : > { %v1293_v9 = vrot.slane %v1292_v51, 1 }
 0x2f9   : > { %v1294_v12 = vadd.f32 %v1293_v9, %v1292_v51 }
 0x2fb   : > { %v1295_v14 = vadd.f32 %v1294_v12, %v1273_v10 }
 0x2fd   : > { %1297 = vst.msk [vmem:[#allocation2] sm:$0x1] %vm1271_vm5, %v1295_v14 }
 0x304   : > { %v1311_v15 = vld [vmem:[#allocation2] sm:$0x1] }
 0x305   : > { %v1312_v42 = vmul.f32 0.015625, %v1311_v15 }
 0x307   : > { %1762 = vmatmul.mubr.msk.f32.vlgmr.msra.gmra.mrb[8].mxu0 %vm993_vm4, %v1312_v42 }
 0x3da   : > { %v1384_v16 = vpop.f32.mrb[8].mxu0 }
 0x3db   : > { %v1388_v18 = vmax.f32 %v1384_v16, 0.0  ;;  %v1763_v52 = vpop.f32.mrb[9].mxu0 }
 0x3dd   : > { %1767 = vmatmul.mubr.msk.f32.vlgmr.msra.gmra.mrb[16].mxu1 %vm1390_vm7, %v1388_v18 }
 0x4b0   : > { %v1464_v11 = vpop.f32.mrb[16].mxu1 }
 0x4b1   : > { %v1631_v20 = vmul.f32 -1.442695, %v1464_v11  ;;  %v1768_v7 = vpop.f32.mrb[17].mxu1 }
 0x4b3   : > { %1867 = vpow2.f32 %v1631_v20 }
 0x4bd   : > { %v1868_v13 = vpop.eup %1867 }
 0x4be   : > { %v1471_v22 = vadd.f32 1.0, %v1868_v13 }
 0x4c0   : > { %1869 = vrcp.f32 %v1471_v22 }
 0x4ca   : > { %v1870_v1 = vpop.eup %1869 }
 0x4cb   : > { %v1485_v4 = vrot.slane %v1870_v1, %v1484_v0 }
 0x4cd   : > { %v1486_v17 = vmul.f32 %v1485_v4, %v1474_v3  ;;  %v1487_v36 = vmul.f32 %v1485_v4, %v1475_v2  ;;  %v1488_v38 = vmul.f32 %v1485_v4, %v1476_v6  ;;  %v1489_v21 = vmul.f32 %v1485_v4, %v1477_v5 }
 0x4ce   : > { %v1490_v39 = vmul.f32 %v1485_v4, %v1478_v32  ;;  %v1491_v40 = vmul.f32 %v1485_v4, %v1479_v8  ;;  %v1492_v43 = vmul.f32 %v1485_v4, %v1480_v35  ;;  %v1493_v44 = vmul.f32 %v1485_v4, %v1481_v34 }
 0x4cf   : > { %1494 = vst.msk [vmem:[%s2444_s14] sm:$0xff] %vm993_vm4, %v1486_v17  ;;  %1495 = vst.msk [vmem:[%s2444_s14 + $0x8] sm:$0xff] %vm993_vm4, %v1487_v36 }
 0x4d0   : > { %1496 = vst.msk [vmem:[%s2444_s14 + $0x10] sm:$0xff] %vm993_vm4, %v1488_v38  ;;  %1497 = vst.msk [vmem:[%s2444_s14 + $0x18] sm:$0xff] %vm993_vm4, %v1489_v21 }
 0x4d1   : > { %1498 = vst.msk [vmem:[%s2444_s14 + $0x20] sm:$0xff] %vm993_vm4, %v1490_v39  ;;  %1499 = vst.msk [vmem:[%s2444_s14 + $0x28] sm:$0xff] %vm993_vm4, %v1491_v40 }
 0x4d2   : > { %1500 = vst.msk [vmem:[%s2444_s14 + $0x30] sm:$0xff] %vm993_vm4, %v1492_v43  ;;  %1501 = vst.msk [vmem:[%s2444_s14 + $0x38] sm:$0xff] %vm993_vm4, %v1493_v44 }
 0x4d3 PF: > { %s25_s24 = sadd.s32 1, %s1951_s24   ;;  %s2529_s19 = smov %s1935_s20 }
 0x4d4   : > { %p22_p9 = scmp.ge.s32.totalorder %s25_s24, 4   ;;  %s2530_s20 = smov %s1939_s21 }
 0x4d5   : > { %s2531_s21 = smov %s2078_s30  ;;  %s2532_s22 = smov %s1947_s23 }
 0x4d6   : > { %s2533_s23 = smov %s2535_s25  ;;  %24 = sbr.rel (!%p22_p9) target bundleno = 6 (0x6), region = 113 }
 0x4dd   :  { %1523 = vsyncpa [#allocation5], 1 }
 0x4de   :  { %1525 = vsyncpa [#allocation5 + $0x1], 1 }

</bundles_post_ra>
